<compile_context>
chip_gen: v7x
topology: tpu7x:2x2x1
jax: 0.10.0
libtpu: 0.0.40
codegen_flags: <defaults>
</compile_context>

<pallas_src>
import dataclasses
import functools

import jax
import jax.numpy as jnp
from jax.experimental import pallas as pl
from jax.experimental.pallas import tpu as pltpu


def _fc_kernel(x_ref, w_ref, b_ref, o_ref, acc_ref):
    # x_ref: (tm, tk), w_ref: (tk, tn), b_ref: (1, tn) f32, o_ref: (tm, tn)
    k = pl.program_id(2)

    @pl.when(k == 0)
    def _():
        acc_ref[...] = jnp.zeros_like(acc_ref)

    acc_ref[...] += jnp.dot(
        x_ref[...], w_ref[...], preferred_element_type=jnp.float32
    )

    @pl.when(k == pl.num_programs(2) - 1)
    def _():
        o_ref[...] = (acc_ref[...] + b_ref[...]).astype(o_ref.dtype)


def _round_up(v, q):
    return (v + q - 1) // q * q


def _cdiv(a, b):
    return -(-a // b)


def _balanced_tile(dim, max_tile, quantum):
    """Tile size <= ~max_tile, multiple of quantum, padding < 1 tile."""
    dim_q = _round_up(max(dim, 1), quantum)
    max_q = _round_up(max_tile, quantum)
    if dim_q <= max_q:
        return dim_q
    n_blocks = _cdiv(dim_q, max_q)
    return _round_up(_cdiv(dim_q, n_blocks), quantum)


# Conservative streamed-tile budget: fits v7x's 64 MiB physical VMEM with
# plenty of headroom; v5e/v6e (128 MiB) trivially cover it.
_VMEM_TILE_BUDGET = 24 * 1024 * 1024


@dataclasses.dataclass(frozen=True)
class FpnFcPlan:
    input_dim: int
    output_dim: int
    k_pad: int
    n_pad: int
    tk: int
    tn: int
    tm_cap: int
    sub_q: int
    compute_dtype: object          # numpy dtype
    weight_buffers: int
    vmem_limit_bytes: int


def prepare_fpn_fc(weight_t, bias, *, batch_hint=128,
                   compute_dtype=jnp.bfloat16, weight_buffers=2,
                   vmem_tile_budget=_VMEM_TILE_BUDGET):
    """One-time parameter prep: cast + pad weight/bias, build the tile plan.

    weight_t: (input_dim, output_dim) -- transposed nn.Linear weight.
    bias:     (output_dim,)
    Returns (plan, weight_padded, bias_padded) to pass to fpn_fc_forward.
    Do this once at parameter setup, NOT per forward call.
    """
    K, N = weight_t.shape
    compute_dtype = jnp.dtype(compute_dtype)
    xb = wb = compute_dtype.itemsize
    ob = 4                         # budget output tiles as f32 (worst case)
    sub_q = 8 if xb >= 4 else 16   # bf16 packs two rows per sublane

    tk_cap = 2048 if wb <= 2 else 1024
    tn_cap = 1024
    tk = _balanced_tile(K, tk_cap, 128)
    tn = _balanced_tile(N, tn_cap, 128)

    def _tm_cap_for(tn_):
        # weights (double/triple buffered) + bias double buffer
        w_stream = weight_buffers * tk * tn_ * wb + 2 * tn_ * 4
        # per-row bytes: x (double buffered) + out (double buffered) + acc
        row = 2 * tk * xb + 2 * tn_ * ob + tn_ * 4
        cap = max(sub_q, max(vmem_tile_budget - w_stream, 0) // row)
        return max(sub_q, cap // sub_q * sub_q)

    tm_cap = _tm_cap_for(tn)
    n_pad = _round_up(N, tn)

    # If the whole (hinted) batch fits one M block, make the parallel N axis
    # have >= 2 blocks so both v7x TensorCores get work (no-op on v5e/v6e).
    if (_round_up(max(batch_hint, 1), sub_q) <= tm_cap
            and n_pad // tn < 2 and _round_up(N, 128) >= 512):
        tn = _round_up(_cdiv(_round_up(N, 128), 2), 128)
        n_pad = _round_up(N, tn)
        tm_cap = _tm_cap_for(tn)

    k_pad = _round_up(K, tk)

    # Explicit scoped-VMEM limit covering the worst-case (tm = tm_cap) call.
    w_stream = weight_buffers * tk * tn * wb + 2 * tn * 4
    row = 2 * tk * xb + 2 * tn * ob + tn * 4
    footprint = w_stream + tm_cap * row
    vmem_limit = min(48 * 1024 * 1024,
                     max(32 * 1024 * 1024, int(1.5 * footprint) + (1 << 20)))

    # One-time HBM copies (moved out of the per-call path on purpose).
    weight_p = weight_t.astype(compute_dtype)
    if (k_pad, n_pad) != (K, N):
        weight_p = jnp.pad(weight_p, ((0, k_pad - K), (0, n_pad - N)))
    bias_p = bias.astype(jnp.float32)
    if n_pad != N:
        bias_p = jnp.pad(bias_p, (0, n_pad - N))
    bias_p = bias_p.reshape(1, n_pad)

    plan = FpnFcPlan(
        input_dim=K, output_dim=N, k_pad=k_pad, n_pad=n_pad,
        tk=tk, tn=tn, tm_cap=tm_cap, sub_q=sub_q,
        compute_dtype=compute_dtype, weight_buffers=weight_buffers,
        vmem_limit_bytes=vmem_limit)
    return plan, weight_p, bias_p


def fpn_fc_forward(feature_list, weight_p, bias_p, *, plan, out_dtype=None):
    """Returns (B, output_dim) = concat(feature_list, 1) @ weight + bias."""
    # TODO(synk): fuse the concat into the kernel via a scalar-prefetched
    # per-feature K-offset table (PrefetchScalarGridSpec) for large B*K.
    x = jnp.concatenate(feature_list, axis=1)
    B, K = x.shape
    assert K == plan.input_dim, (K, plan.input_dim)
    if out_dtype is None:
        out_dtype = x.dtype
    x = x.astype(plan.compute_dtype)

    # M tiling for the actual batch (cheap: only the small activation pads).
    b_q = _round_up(B, plan.sub_q)
    if b_q <= plan.tm_cap:
        tm = b_q
    else:
        n_m_blocks = _cdiv(b_q, plan.tm_cap)
        tm = _round_up(_cdiv(b_q, n_m_blocks), plan.sub_q)
    b_pad = _round_up(B, tm)

    if (b_pad, plan.k_pad) != (B, K):
        x = jnp.pad(x, ((0, b_pad - B), (0, plan.k_pad - K)))

    tk, tn = plan.tk, plan.tn
    n_m, n_n, n_k = b_pad // tm, plan.n_pad // tn, plan.k_pad // tk
    grid = (n_m, n_n, n_k)

    xb = plan.compute_dtype.itemsize
    ob = jnp.dtype(out_dtype).itemsize
    cost = pl.CostEstimate(
        flops=2 * b_pad * plan.k_pad * plan.n_pad,
        transcendentals=0,
        # Actual streamed bytes: x is re-read once per N block, the weight once
        # per M block, bias once per (i, j), output written once.
        bytes_accessed=(n_n * b_pad * plan.k_pad * xb
                        + n_m * plan.k_pad * plan.n_pad * xb
                        + n_m * plan.n_pad * 4
                        + b_pad * plan.n_pad * ob),
    )

    w_spec = pl.BlockSpec((tk, tn), lambda i, j, k: (k, j))
    if plan.weight_buffers > 2 and n_k >= plan.weight_buffers:
        # Optional deeper weight pipeline; costs one extra (tk, tn) VMEM buffer.
        w_spec = pl.BlockSpec((tk, tn), lambda i, j, k: (k, j),
                              pipeline_mode=pl.Buffered(plan.weight_buffers))

    out = pl.pallas_call(
        _fc_kernel,
        out_shape=jax.ShapeDtypeStruct((b_pad, plan.n_pad), out_dtype),
        grid_spec=pltpu.PrefetchScalarGridSpec(
            num_scalar_prefetch=0,
            grid=grid,
            in_specs=[
                pl.BlockSpec((tm, tk), lambda i, j, k: (i, k)),   # activations
                w_spec,                                           # weights
                pl.BlockSpec((1, tn), lambda i, j, k: (0, j)),    # bias (f32)
            ],
            out_specs=pl.BlockSpec((tm, tn), lambda i, j, k: (i, j)),
            scratch_shapes=[pltpu.VMEM((tm, tn), jnp.float32)],
        ),
        compiler_params=pltpu.CompilerParams(
            dimension_semantics=("parallel", "parallel", "arbitrary"),
            vmem_limit_bytes=plan.vmem_limit_bytes,
        ),
        cost_estimate=cost,
    )(x, weight_p, bias_p)

    if (b_pad, plan.n_pad) != (B, plan.output_dim):
        out = out[:B, :plan.output_dim]
    return out


def init_linear_params(key, input_dim, output_dim, dtype=jnp.float32):
    """PyTorch-style nn.Linear init: U(-1/sqrt(in), 1/sqrt(in))."""
    kw, kb = jax.random.split(key)
    bound = 1.0 / float(input_dim) ** 0.5
    # PyTorch stores weight as (out, in); we keep the transposed (in, out) copy.
    w = jax.random.uniform(kw, (input_dim, output_dim), dtype, -bound, bound)
    b = jax.random.uniform(kb, (output_dim,), dtype, -bound, bound)
    return w, b


if __name__ == "__main__":
    key = jax.random.PRNGKey(0)
    k1, k2, k3, kp, k4, k5, kp2 = jax.random.split(key, 7)

    # --- Case 1: tiny shapes (three (B, 16) features -> in=48, out=32) -------
    B = 4
    dims = (16, 16, 16)
    input_dim = sum(dims)
    output_dim = 32

    feature_list = [
        jax.random.normal(k1, (B, dims[0]), jnp.float32),
        jax.random.normal(k2, (B, dims[1]), jnp.float32),
        jax.random.normal(k3, (B, dims[2]), jnp.float32),
    ]
    weight_t, bias = init_linear_params(kp, input_dim, output_dim)

    # Reference in plain JAX (same math as torch.cat + nn.Linear).
    x_ref = jnp.concatenate(feature_list, axis=1)
    ref = x_ref @ weight_t + bias

    # f32 path: near-exact check.
    plan32, w32, b32 = prepare_fpn_fc(
        weight_t, bias, batch_hint=B, compute_dtype=jnp.float32)
    fwd_f32 = jax.jit(functools.partial(fpn_fc_forward, plan=plan32))
    out_f32 = jax.block_until_ready(fwd_f32(feature_list, w32, b32))
    assert out_f32.shape == (B, output_dim)
    assert jnp.allclose(out_f32, ref, atol=1e-5, rtol=1e-5), "f32 mismatch"

    # Default bf16 weights-at-rest path (halved weight stream): loose check.
    plan16, w16, b16 = prepare_fpn_fc(weight_t, bias, batch_hint=B)
    fwd_bf16 = jax.jit(functools.partial(fpn_fc_forward, plan=plan16))
    out_bf16 = jax.block_until_ready(fwd_bf16(feature_list, w16, b16))
    assert out_bf16.shape == (B, output_dim)
    assert jnp.allclose(
        out_bf16.astype(jnp.float32), ref, atol=5e-2, rtol=5e-2
    ), "bf16 mismatch"

    # --- Case 2: larger shapes (pad-free tiles, 2-block parallel N axis) -----
    B2 = 96
    dims2 = (256, 256, 256)
    in2, out2 = sum(dims2), 1024
    feats2 = [jax.random.normal(k, (B2, d), jnp.float32)
              for k, d in zip((k4, k5, k1), dims2)]
    weight_t2, bias2 = init_linear_params(kp2, in2, out2)
    ref2 = jnp.concatenate(feats2, axis=1) @ weight_t2 + bias2

    plan2, w2p, b2p = prepare_fpn_fc(weight_t2, bias2, batch_hint=B2)
    fwd2 = jax.jit(functools.partial(fpn_fc_forward, plan=plan2))
    out2_bf16 = jax.block_until_ready(fwd2(feats2, w2p, b2p))
    assert out2_bf16.shape == (B2, out2)
    assert jnp.allclose(
        out2_bf16.astype(jnp.float32), ref2, atol=1e-1, rtol=5e-2
    ), "large-case bf16 mismatch"

    print("KERNEL_OK")
</pallas_src>

<mosaic_0001>
module attributes {stable_mosaic.version = 11 : i64} {
  func.func @_fc_kernel(%arg0: i32, %arg1: i32, %arg2: i32, %arg3: memref<8x128xf32, #tpu.memory_space<vmem>>, %arg4: memref<128x128xf32, #tpu.memory_space<vmem>>, %arg5: memref<1x128xf32, #tpu.memory_space<vmem>>, %arg6: memref<8x128xf32, #tpu.memory_space<vmem>>, %arg7: memref<8x128xf32, #tpu.memory_space<vmem>>) attributes {dimension_semantics = [#tpu.dimension_semantics<parallel>, #tpu.dimension_semantics<parallel>, #tpu.dimension_semantics<arbitrary>], iteration_bounds = array<i64: 1, 1, 1>, scalar_prefetch = 0 : i64, scratch_operands = 1 : i64, tpu.core_type = #tpu.core_type<tc>, window_params = [{transform_indices = @transform_0, window_bounds = array<i64: 8, 128>}, {transform_indices = @transform_1, window_bounds = array<i64: 128, 128>}, {transform_indices = @transform_2, window_bounds = array<i64: 1, 128>}, {transform_indices = @transform_3, window_bounds = array<i64: 8, 128>}]} {
    %c0_i32 = arith.constant 0 : i32
    %0 = arith.cmpi eq, %arg2, %c0_i32 : i32
    %1 = arith.extui %0 : i1 to i32
    %c0_i32_0 = arith.constant 0 : i32
    %2 = arith.cmpi ne, %1, %c0_i32_0 : i32
    scf.if %2 {
      %cst_10 = arith.constant 0.000000e+00 : f32
      %12 = vector.broadcast %cst_10 : f32 to vector<8x128xf32>
      %c0_11 = arith.constant 0 : index
      %c0_12 = arith.constant 0 : index
      %13 = vector.load %arg7[%c0_11, %c0_12] : memref<8x128xf32, #tpu.memory_space<vmem>>, vector<8x128xf32>
      tpu.vector_store %arg7[%c0_11, %c0_12], %12 {strides = array<i32>} : memref<8x128xf32, #tpu.memory_space<vmem>>, vector<8x128xf32>,
    } else {
    }
    %c0 = arith.constant 0 : index
    %c0_1 = arith.constant 0 : index
    %3 = vector.load %arg7[%c0, %c0_1] : memref<8x128xf32, #tpu.memory_space<vmem>>, vector<8x128xf32>
    %c0_2 = arith.constant 0 : index
    %c0_3 = arith.constant 0 : index
    %4 = vector.load %arg3[%c0_2, %c0_3] : memref<8x128xf32, #tpu.memory_space<vmem>>, vector<8x128xf32>
    %c0_4 = arith.constant 0 : index
    %c0_5 = arith.constant 0 : index
    %5 = vector.load %arg4[%c0_4, %c0_5] : memref<128x128xf32, #tpu.memory_space<vmem>>, vector<128x128xf32>
    %cst = arith.constant dense<0.000000e+00> : vector<8x128xf32>
    %6 = tpu.matmul %4, %5, %cst {dimension_numbers = #tpu.dot_dimension_numbers<[1], [0], [0], [1], [0, 0, 1, 1], [], []>} : vector<8x128xf32>, vector<128x128xf32>, vector<8x128xf32> -> vector<8x128xf32>
    %7 = arith.addf %3, %6 : vector<8x128xf32>
    %c0_6 = arith.constant 0 : index
    %c0_7 = arith.constant 0 : index
    %8 = vector.load %arg7[%c0_6, %c0_7] : memref<8x128xf32, #tpu.memory_space<vmem>>, vector<8x128xf32>
    tpu.vector_store %arg7[%c0_6, %c0_7], %7 {strides = array<i32>} : memref<8x128xf32, #tpu.memory_space<vmem>>, vector<8x128xf32>,
    %c0_i32_8 = arith.constant 0 : i32
    %9 = arith.cmpi eq, %arg2, %c0_i32_8 : i32
    %10 = arith.extui %9 : i1 to i32
    %c0_i32_9 = arith.constant 0 : i32
    %11 = arith.cmpi ne, %10, %c0_i32_9 : i32
    scf.if %11 {
      %c0_10 = arith.constant 0 : index
      %c0_11 = arith.constant 0 : index
      %12 = vector.load %arg7[%c0_10, %c0_11] : memref<8x128xf32, #tpu.memory_space<vmem>>, vector<8x128xf32>
      %c0_12 = arith.constant 0 : index
      %c0_13 = arith.constant 0 : index
      %13 = vector.load %arg5[%c0_12, %c0_13] : memref<1x128xf32, #tpu.memory_space<vmem>>, vector<1x128xf32>
      %14 = vector.broadcast %13 : vector<1x128xf32> to vector<8x128xf32>
      %15 = arith.addf %12, %14 : vector<8x128xf32>
      %c0_14 = arith.constant 0 : index
      %c0_15 = arith.constant 0 : index
      %16 = vector.load %arg6[%c0_14, %c0_15] : memref<8x128xf32, #tpu.memory_space<vmem>>, vector<8x128xf32>
      tpu.vector_store %arg6[%c0_14, %c0_15], %15 {strides = array<i32>} : memref<8x128xf32, #tpu.memory_space<vmem>>, vector<8x128xf32>,
    } else {
    }
    return
  }
  func.func @transform_0(%arg0: i32, %arg1: i32, %arg2: i32) -> (i32, i32) {
    %c0_i32 = arith.constant 0 : i32
    return %arg0, %arg2 : i32, i32
  }
  func.func @transform_1(%arg0: i32, %arg1: i32, %arg2: i32) -> (i32, i32) {
    %c0_i32 = arith.constant 0 : i32
    return %arg2, %arg1 : i32, i32
  }
  func.func @transform_2(%arg0: i32, %arg1: i32, %arg2: i32) -> (i32, i32) {
    %c0_i32 = arith.constant 0 : i32
    %c0_i32_0 = arith.constant 0 : i32
    return %c0_i32, %arg1 : i32, i32
  }
  func.func @transform_3(%arg0: i32, %arg1: i32, %arg2: i32) -> (i32, i32) {
    %c0_i32 = arith.constant 0 : i32
    return %arg0, %arg1 : i32, i32
  }
}

</mosaic_0001>

<bundles_post_ra>
// kernel: fpn_fc_forward.1
= control target key start
LH: loop header
LB: loop body
LE: loop exit
PB: predicated region body
PF: predicated region fallthrough
CT: control target
= control target key end

     0   :  { %8 = vsyncpa [#allocation4], 0  ;;  %s248_s12 = smov [#allocation3]   ;;  %s295_s0 = inlined_call_operand.vmem [shape: f32[8,128], index: 0, kind: input, shape index: {}]   ;;  %s296_s1 = inlined_call_operand.hbm [shape: f32[128,128], index: 1, kind: input, shape index: {}]   ;;  %s297_s2 = inlined_call_operand.vmem [shape: f32[1,128], index: 2, kind: input, shape index: {}]   ;;  %s298_s3 = inlined_call_operand.vmem [shape: f32[8,128], index: 3, kind: output, shape index: {}]  }
   0x1   :  { %s16_s13 = sshll.u32 %s248_s12, 4  ;;  %s224_s16 = scalar_lea.hbm %s296_s1, 2048  ;;  %s17_s13 = int_to_ptr.vmem [resolvable:$true] %s16_s13 }
   0x2   :  { %p225_p0 = scmp.ne.s32.totalorder %s296_s1, %s224_s16  ;;  %p228_p1 = scmp.lt.u32.totalorder %s224_s16, %s296_s1 }
   0x4   :  { %p230_p2 = pnand %p228_p1, %p225_p0 }
   0x6   :  { %233 = shalt.err (!%p230_p2)
}
   0x7   :  { %s234_s21 = scalar_lea.vmem %s17_s13, 2048  ;;  %p239_p4 = scmp.lt.s32.totalorder %s17_s13, %s17_s13 }
   0x8   :  { %p235_p3 = scmp.ne.s32.totalorder %s17_s13, %s234_s21  ;;  %p240_p5 = scmp.lt.s32.totalorder %s234_s21, %s234_s21 }
   0xa   :  { %p241_p6 = por %p240_p5, %p239_p4 }
   0xc   :  { %p242_p7 = pnand %p241_p6, %p235_p3 }
   0xe   :  { %245 = shalt.err (!%p242_p7)
}
   0xf   :  { %s249_s22 = smov 128   ;;  %s250_s23 = smov 8  }
  0x10   :  { %22 = dma.hbm_to_vmem [thread:$0]  %s296_s1, 2048, %s17_s13, [#allocation4], %s249_s22, %s249_s22, %s250_s23  }
  0x11   :  { %246 = dma.done.wait [#allocation4], 2048  }
  0x12   :  { %247 = vsyncadd [#allocation4], 4294965248  ;;  %v251_v0 = vmov 0.0|0.0   ;;  %vm252_vm0 = vmmov 0   ;;  %v253_v1 = vmov 0.0   ;;  %v35_v2 = vld [vmem:[#allocation3] sm:$0xff] }
  0x13   :  { %194 = vmatprep.subr.bf16.mxu0 %v251_v0  ;;  %191 = vmatprep.mubr.msk.f32.mxu0 %vm252_vm0, %v253_v1  ;;  %v36_v3 = vld [vmem:[#allocation3 + $0x8] sm:$0xff]  ;;  %v37_v4 = vld [vmem:[#allocation3 + $0x10] sm:$0xff]  ;;  %v38_v6 = vld [vmem:[#allocation3 + $0x18] sm:$0xff] }
  0x14   :  { %v195_v5 = vpack.c.bf16 %v36_v3, %v35_v2  ;;  %v198_v7 = vpack.c.bf16 %v38_v6, %v37_v4  ;;  %v39_v8 = vld [vmem:[#allocation3 + $0x20] sm:$0xff]  ;;  %v40_v9 = vld [vmem:[#allocation3 + $0x28] sm:$0xff]  ;;  %v41_v11 = vld [vmem:[#allocation3 + $0x30] sm:$0xff] }
  0x15   :  { %v201_v10 = vpack.c.bf16 %v40_v9, %v39_v8  ;;  %v42_v12 = vld [vmem:[#allocation3 + $0x38] sm:$0xff]  ;;  %v43_v14 = vld [vmem:[#allocation3 + $0x40] sm:$0xff]  ;;  %v44_v15 = vld [vmem:[#allocation3 + $0x48] sm:$0xff] }
  0x16   :  { %196 = vmatpush3.bf16.msra.mxu0 %v195_v5  ;;  %v204_v13 = vpack.c.bf16 %v42_v12, %v41_v11  ;;  %v207_v16 = vpack.c.bf16 %v44_v15, %v43_v14  ;;  %v45_v17 = vld [vmem:[#allocation3 + $0x50] sm:$0xff]  ;;  %v46_v18 = vld [vmem:[#allocation3 + $0x58] sm:$0xff]  ;;  %v47_v20 = vld [vmem:[#allocation3 + $0x60] sm:$0xff] }
  0x17   :  { %197 = vmatprep.subr.bf16.mxu0 %v251_v0  ;;  %v210_v19 = vpack.c.bf16 %v46_v18, %v45_v17  ;;  %v48_v21 = vld [vmem:[#allocation3 + $0x68] sm:$0xff]  ;;  %v49_v23 = vld [vmem:[#allocation3 + $0x70] sm:$0xff]  ;;  %v50_v24 = vld [vmem:[#allocation3 + $0x78] sm:$0xff] }
  0x18   :  { %v213_v22 = vpack.c.bf16 %v48_v21, %v47_v20  ;;  %v216_v25 = vpack.c.bf16 %v50_v24, %v49_v23  ;;  %v34_v26 = vld [vmem:[%s295_s0] sm:$0xff] }
  0x19   :  { %v141_v27 = vld [vmem:[%s297_s2] ss:$0 sm:$0xff] }
  0x1a   :  { %199 = vmatpush3.bf16.msra.mxu0 %v198_v7 }
  0x1b   :  { %200 = vmatprep.subr.bf16.mxu0 %v251_v0 }
  0x1e   :  { %202 = vmatpush3.bf16.msra.mxu0 %v201_v10 }
  0x1f   :  { %203 = vmatprep.subr.bf16.mxu0 %v251_v0 }
  0x22   :  { %205 = vmatpush3.bf16.msra.mxu0 %v204_v13 }
  0x23   :  { %206 = vmatprep.subr.bf16.mxu0 %v251_v0 }
  0x26   :  { %208 = vmatpush3.bf16.msra.mxu0 %v207_v16 }
  0x27   :  { %209 = vmatprep.subr.bf16.mxu0 %v251_v0 }
  0x2a   :  { %211 = vmatpush3.bf16.msra.mxu0 %v210_v19 }
  0x2b   :  { %212 = vmatprep.subr.bf16.mxu0 %v251_v0 }
  0x2e   :  { %214 = vmatpush3.bf16.msra.mxu0 %v213_v22 }
  0x2f   :  { %215 = vmatprep.subr.bf16.mxu0 %v251_v0 }
  0x32   :  { %217 = vmatpush3.bf16.msra.mxu0 %v216_v25 }
  0x35   :  { %192 = vmatmul.mubr.f32.vlgmr.msra.gmra.mrb[0].mxu0 %v34_v26 }
 0x108   :  { %v117_v28 = vpop.f32.mrb[0].mxu0 }
 0x109   :  { %v134_v29 = vadd.f32 %v141_v27, %v117_v28  ;;  %v193_v30 = vpop.f32.mrb[1].mxu0 }
 0x10b   :  { %135 = vst [vmem:[%s298_s3] sm:$0xff] %v134_v29 }
 0x10c   :  { %140 = vsyncpa [#allocation4], 1 }

</bundles_post_ra>
